<compile_context>
chip_gen: v5e
topology: v5e:2x2
jax: 0.10.0
libtpu: 0.0.40
codegen_flags: <defaults>
</compile_context>

<pallas_src>
import functools

import jax
import jax.numpy as jnp
from jax.experimental import pallas as pl
from jax.experimental.pallas import tpu as pltpu


def _cdiv(a, b):
    return (a + b - 1) // b


def _num_tensorcores():
    """Best-effort TensorCores-per-chip (v7x: 2; v5e/v6e: 1)."""
    try:
        kind = jax.devices()[0].device_kind.lower()
    except Exception:
        return 1
    return 2 if ("v7" in kind or "7x" in kind) else 1


def _mask_mean_kernel(x_ref, keep_ref, inv_ref, o_ref, acc_ref, *,
                      seq_len, ts, precision):
    # x_ref:    (TB, tS, tD)    input tile (native dtype)
    # keep_ref: (TB, 1,  tS)    keep mask in x's dtype (1 = keep, 0 = masked)
    # inv_ref:  (TB, 1, 1) f32  precomputed 1 / (count + 1e-7)
    # o_ref:    (TB, 1, tD)     output tile
    # acc_ref:  (TB, 1, tD) f32 running masked sum (VMEM scratch)
    s = pl.program_id(2)

    @pl.when(s == 0)
    def _init():
        acc_ref[...] = jnp.zeros_like(acc_ref)

    x = x_ref[...]
    keep = keep_ref[...]

    if seq_len % ts != 0:
        # Ragged last S block: x is NOT padded in HBM, so the tail of the VMEM
        # buffer holds unspecified data.  Zero it (NaN-safe) before the matmul.
        lim = seq_len - s * ts                      # >= ts except on the last step
        x = jnp.where(
            jax.lax.broadcasted_iota(jnp.int32, x.shape, 1) < lim, x, 0.0)
        keep = jnp.where(
            jax.lax.broadcasted_iota(jnp.int32, keep.shape, 2) < lim, keep, 0.0)

    # Masked sum over S as a batched MXU contraction: keep has S on lanes and
    # x has S on sublanes -> natural MXU operand layouts, f32 accumulation.
    acc_ref[...] += jnp.einsum(
        "bqs,bsd->bqd", keep, x,
        preferred_element_type=jnp.float32, precision=precision)

    @pl.when(s == pl.num_programs(2) - 1)
    def _finalize():
        o_ref[...] = (acc_ref[...] * inv_ref[...]).astype(o_ref.dtype)


def _choose_tiles(B, S, D, itemsize, out_itemsize, n_cores, budget):
    """Pick (TB, tS, tD) block sizes."""
    base_tb = 16 if out_itemsize <= 2 else 8
    TB = base_tb if B >= base_tb else B

    # ---- D tiling ----------------------------------------------------------
    # Candidates: full D plus divisors of D that are multiples of 128, so the
    # x / output lane dim stays dense and every store is unmasked.
    d_cands = [D] + [d for d in range(128, D, 128) if D % d == 0]
    min_rows = min(S, 128)
    feasible = [d for d in d_cands if TB * min_rows * d * itemsize <= budget]
    if not feasible:
        feasible = [min(d_cands)]
    tD = max(feasible)

    if n_cores > 1:
        # v7x: both TensorCores only get work through the parallel grid axes;
        # make sure batch x D gives >= 2 blocks per core when possible.
        nb = _cdiv(B, TB)
        for want in (2 * n_cores, n_cores):
            if nb * (D // tD) >= want:
                break
            better = [d for d in feasible if nb * (D // d) >= want]
            if better:
                tD = max(better)
                break

    # ---- S tiling (reduction axis, innermost grid dim) ----------------------
    if TB * S * tD * itemsize <= budget:
        tS = S                                   # whole reduction in one block
    else:
        rows = budget // (TB * tD * itemsize)
        tS = max(128, (rows // 128) * 128)       # x128 keeps keep's lane dim dense
        tS = min(tS, S)
        if tS % 128 == 0:
            # Prefer an exact divisor of S (skips the ragged-tail select) as
            # long as it doesn't shrink the block by more than ~2x.
            for cand in range(tS, max(127, tS // 2 - 1), -128):
                if S % cand == 0:
                    tS = cand
                    break
    return TB, tS, tD


def mask_mean(x, src_mask, *, block_bytes_target=6 * 1024 * 1024):
    """Masked mean over axis 1. x: (B,S,D); src_mask: (B,S) bool, True = masked."""
    B, S, D = x.shape
    out_dtype = x.dtype
    itemsize = jnp.dtype(x.dtype).itemsize
    out_itemsize = jnp.dtype(out_dtype).itemsize

    # keep = 1 where the position participates.  Per-row count + reciprocal are
    # precomputed here (B*S work, ~D x cheaper than the kernel itself).
    keep_f32 = jnp.where(src_mask, 0.0, 1.0).astype(jnp.float32)          # (B, S)
    inv = (1.0 / (jnp.sum(keep_f32, axis=1, keepdims=True) + 1e-07))      # (B, 1)
    inv = inv[..., None].astype(jnp.float32)                              # (B, 1, 1)
    keep = keep_f32.astype(x.dtype)[:, None, :]                           # (B, 1, S)

    TB, tS, tD = _choose_tiles(B, S, D, itemsize, out_itemsize,
                               _num_tensorcores(), block_bytes_target)

    grid = (_cdiv(B, TB), D // tD, _cdiv(S, tS))      # reduction (S) axis last

    # Explicit scoped-VMEM limit covering the double-buffered blocks + scratch
    # (sizes estimated with (8,128) tile padding, plus headroom).
    pad8 = lambda n: _cdiv(n, 8) * 8
    pad128 = lambda n: _cdiv(n, 128) * 128
    x_blk = TB * pad8(tS) * pad128(tD) * itemsize
    keep_blk = TB * 8 * pad128(tS) * itemsize
    inv_blk = TB * 8 * 128 * 4
    out_blk = TB * 8 * pad128(tD) * out_itemsize
    acc_blk = TB * 8 * pad128(tD) * 4
    vmem_need = 2 * (x_blk + keep_blk + inv_blk + out_blk) + acc_blk
    vmem_limit = max(int(1.5 * vmem_need) + (2 << 20), 16 << 20)

    precision = jax.lax.Precision.HIGHEST if x.dtype == jnp.float32 else None
    kernel = functools.partial(_mask_mean_kernel, seq_len=S, ts=tS,
                               precision=precision)

    out = pl.pallas_call(
        kernel,
        out_shape=jax.ShapeDtypeStruct((B, 1, D), out_dtype),
        grid_spec=pltpu.PrefetchScalarGridSpec(
            num_scalar_prefetch=0,
            grid=grid,
            in_specs=[
                pl.BlockSpec((TB, tS, tD), lambda b, d, s: (b, s, d)),
                pl.BlockSpec((TB, 1, tS), lambda b, d, s: (b, 0, s)),
                pl.BlockSpec((TB, 1, 1), lambda b, d, s: (b, 0, 0)),
            ],
            out_specs=pl.BlockSpec((TB, 1, tD), lambda b, d, s: (b, 0, d)),
            scratch_shapes=[pltpu.VMEM((TB, 1, tD), jnp.float32)],
        ),
        compiler_params=pltpu.CompilerParams(
            dimension_semantics=("parallel", "parallel", "arbitrary"),
            vmem_limit_bytes=int(vmem_limit),
        ),
    )(x, keep, inv)

    return out[:, 0, :]            # (B, 1, D) -> (B, D); unit-dim squeeze is free


def mask_mean_ref(x, src_mask):
    """Pure-JAX reference mirroring the PyTorch forward."""
    mask = jnp.where(src_mask[..., None], 0.0, 1.0).astype(jnp.float32)
    summ = jnp.sum(x.astype(jnp.float32) * mask, axis=1)
    return (summ / (jnp.sum(mask, axis=1) + 1e-07)).astype(x.dtype)


if __name__ == "__main__":
    key = jax.random.PRNGKey(0)
    kx, km = jax.random.split(key)

    # Small shape matching the module's (batch, seq, hidden) layout.
    B, S, D = 2, 8, 32
    x = jax.random.normal(kx, (B, S, D), dtype=jnp.float32)
    src_mask = jax.random.bernoulli(km, p=0.3, shape=(B, S))   # True = masked out

    out = jax.block_until_ready(mask_mean(x, src_mask))
    ref = mask_mean_ref(x, src_mask)
    assert out.shape == (B, D)
    assert jnp.allclose(out, ref, atol=1e-4, rtol=1e-4), "mismatch vs reference"

    # Second check: force S/D tiling and the ragged (non-dividing) tail path.
    kx2, km2 = jax.random.split(km)
    B2, S2, D2 = 3, 200, 256
    x2 = jax.random.normal(kx2, (B2, S2, D2), dtype=jnp.float32)
    m2 = jax.random.bernoulli(km2, p=0.4, shape=(B2, S2))
    out2 = jax.block_until_ready(mask_mean(x2, m2, block_bytes_target=256 * 1024))
    assert jnp.allclose(out2, mask_mean_ref(x2, m2), atol=1e-4, rtol=1e-4), \
        "mismatch vs reference (tiled/ragged path)"

    print("KERNEL_OK")
</pallas_src>

<mosaic_0001>
module attributes {stable_mosaic.version = 11 : i64} {
  func.func @_mask_mean_kernel(%arg0: i32, %arg1: i32, %arg2: i32, %arg3: memref<2x8x32xf32, #tpu.memory_space<vmem>>, %arg4: memref<2x1x8xf32, #tpu.memory_space<vmem>>, %arg5: memref<2x1x1xf32, #tpu.memory_space<vmem>>, %arg6: memref<2x1x32xf32, #tpu.memory_space<vmem>>, %arg7: memref<2x1x32xf32, #tpu.memory_space<vmem>>) attributes {dimension_semantics = [#tpu.dimension_semantics<parallel>, #tpu.dimension_semantics<parallel>, #tpu.dimension_semantics<arbitrary>], iteration_bounds = array<i64: 1, 1, 1>, scalar_prefetch = 0 : i64, scratch_operands = 1 : i64, tpu.core_type = #tpu.core_type<tc>, window_params = [{transform_indices = @transform_0, window_bounds = array<i64: 2, 8, 32>}, {transform_indices = @transform_1, window_bounds = array<i64: 2, 1, 8>}, {transform_indices = @transform_2, window_bounds = array<i64: 2, 1, 1>}, {transform_indices = @transform_3, window_bounds = array<i64: 2, 1, 32>}]} {
    %c0_i32 = arith.constant 0 : i32
    %0 = arith.cmpi eq, %arg2, %c0_i32 : i32
    %1 = arith.extui %0 : i1 to i32
    %c0_i32_0 = arith.constant 0 : i32
    %2 = arith.cmpi ne, %1, %c0_i32_0 : i32
    scf.if %2 {
      %cst_14 = arith.constant 0.000000e+00 : f32
      %12 = vector.broadcast %cst_14 : f32 to vector<2x1x32xf32>
      %c0_15 = arith.constant 0 : index
      %c0_16 = arith.constant 0 : index
      %c0_17 = arith.constant 0 : index
      %13 = vector.load %arg7[%c0_15, %c0_16, %c0_17] : memref<2x1x32xf32, #tpu.memory_space<vmem>>, vector<2x1x32xf32>
      tpu.vector_store %arg7[%c0_15, %c0_16, %c0_17], %12 {strides = array<i32>} : memref<2x1x32xf32, #tpu.memory_space<vmem>>, vector<2x1x32xf32>,
    } else {
    }
    %c0 = arith.constant 0 : index
    %c0_1 = arith.constant 0 : index
    %c0_2 = arith.constant 0 : index
    %3 = vector.load %arg3[%c0, %c0_1, %c0_2] : memref<2x8x32xf32, #tpu.memory_space<vmem>>, vector<2x8x32xf32>
    %c0_3 = arith.constant 0 : index
    %c0_4 = arith.constant 0 : index
    %c0_5 = arith.constant 0 : index
    %4 = vector.load %arg4[%c0_3, %c0_4, %c0_5] : memref<2x1x8xf32, #tpu.memory_space<vmem>>, vector<2x1x8xf32>
    %c0_6 = arith.constant 0 : index
    %c0_7 = arith.constant 0 : index
    %c0_8 = arith.constant 0 : index
    %5 = vector.load %arg7[%c0_6, %c0_7, %c0_8] : memref<2x1x32xf32, #tpu.memory_space<vmem>>, vector<2x1x32xf32>
    "tpu.trace_start"() <{level = 10 : i32, message = "bqs,bsd->bqd"}> : () -> ()
    %cst = arith.constant dense<0.000000e+00> : vector<2x1x32xf32>
    %6 = tpu.matmul %4, %3, %cst {dimension_numbers = #tpu.dot_dimension_numbers<[2], [1], [1], [2], [0, 0, 0, 1, 1, 2], [0], [0]>, precision = #tpu.contract_precision<fp32>} : vector<2x1x8xf32>, vector<2x8x32xf32>, vector<2x1x32xf32> -> vector<2x1x32xf32>
    "tpu.trace_stop"() : () -> ()
    %7 = arith.addf %5, %6 : vector<2x1x32xf32>
    %c0_9 = arith.constant 0 : index
    %c0_10 = arith.constant 0 : index
    %c0_11 = arith.constant 0 : index
    %8 = vector.load %arg7[%c0_9, %c0_10, %c0_11] : memref<2x1x32xf32, #tpu.memory_space<vmem>>, vector<2x1x32xf32>
    tpu.vector_store %arg7[%c0_9, %c0_10, %c0_11], %7 {strides = array<i32>} : memref<2x1x32xf32, #tpu.memory_space<vmem>>, vector<2x1x32xf32>,
    %c0_i32_12 = arith.constant 0 : i32
    %9 = arith.cmpi eq, %arg2, %c0_i32_12 : i32
    %10 = arith.extui %9 : i1 to i32
    %c0_i32_13 = arith.constant 0 : i32
    %11 = arith.cmpi ne, %10, %c0_i32_13 : i32
    scf.if %11 {
      %c0_14 = arith.constant 0 : index
      %c0_15 = arith.constant 0 : index
      %c0_16 = arith.constant 0 : index
      %12 = vector.load %arg7[%c0_14, %c0_15, %c0_16] : memref<2x1x32xf32, #tpu.memory_space<vmem>>, vector<2x1x32xf32>
      %c0_17 = arith.constant 0 : index
      %c0_18 = arith.constant 0 : index
      %c0_19 = arith.constant 0 : index
      %13 = vector.load %arg5[%c0_17, %c0_18, %c0_19] : memref<2x1x1xf32, #tpu.memory_space<vmem>>, vector<2x1x1xf32>
      %14 = vector.broadcast %13 : vector<2x1x1xf32> to vector<2x1x32xf32>
      %15 = arith.mulf %12, %14 : vector<2x1x32xf32>
      %c0_20 = arith.constant 0 : index
      %c0_21 = arith.constant 0 : index
      %c0_22 = arith.constant 0 : index
      %16 = vector.load %arg6[%c0_20, %c0_21, %c0_22] : memref<2x1x32xf32, #tpu.memory_space<vmem>>, vector<2x1x32xf32>
      tpu.vector_store %arg6[%c0_20, %c0_21, %c0_22], %15 {strides = array<i32>} : memref<2x1x32xf32, #tpu.memory_space<vmem>>, vector<2x1x32xf32>,
    } else {
    }
    return
  }
  func.func @transform_0(%arg0: i32, %arg1: i32, %arg2: i32) -> (i32, i32, i32) {
    %c0_i32 = arith.constant 0 : i32
    return %arg0, %arg2, %arg1 : i32, i32, i32
  }
  func.func @transform_1(%arg0: i32, %arg1: i32, %arg2: i32) -> (i32, i32, i32) {
    %c0_i32 = arith.constant 0 : i32
    %c0_i32_0 = arith.constant 0 : i32
    return %arg0, %c0_i32, %arg2 : i32, i32, i32
  }
  func.func @transform_2(%arg0: i32, %arg1: i32, %arg2: i32) -> (i32, i32, i32) {
    %c0_i32 = arith.constant 0 : i32
    %c0_i32_0 = arith.constant 0 : i32
    %c0_i32_1 = arith.constant 0 : i32
    return %arg0, %c0_i32, %c0_i32_0 : i32, i32, i32
  }
  func.func @transform_3(%arg0: i32, %arg1: i32, %arg2: i32) -> (i32, i32, i32) {
    %c0_i32 = arith.constant 0 : i32
    %c0_i32_0 = arith.constant 0 : i32
    return %arg0, %c0_i32, %arg1 : i32, i32, i32
  }
}

</mosaic_0001>

<bundles_post_ra>
// kernel: tpu_custom_call.1
= control target key start
LH: loop header
LB: loop body
LE: loop exit
PB: predicated region body
PF: predicated region fallthrough
CT: control target
= control target key end

     0   :  { %8 = vsyncpa [#allocation4], 0  ;;  %s503_s0 = inlined_call_operand.hbm [shape: f32[2,8,32], index: 0, kind: input, shape index: {}]   ;;  %s504_s1 = inlined_call_operand.vmem [shape: f32[2,1,8], index: 1, kind: input, shape index: {}]   ;;  %s505_s2 = inlined_call_operand.vmem [shape: f32[2,1,1], index: 2, kind: input, shape index: {}]   ;;  %s506_s3 = inlined_call_operand.hbm [shape: f32[2,1,32], index: 3, kind: output, shape index: {}]  }
   0x1   :  { %9 = vsyncpa [#allocation5], 0  ;;  %s14_s14 = sshll.u32 %s503_s0, 4  ;;  %s451_s15 = smov [#allocation3]   ;;  %s15_s14 = int_to_ptr.hbm [resolvable:$true] %s14_s14 }
   0x2   :  { %s16_s16 = sshll.u32 %s451_s15, 4  ;;  %s452_s17 = smov 128   ;;  %s17_s16 = int_to_ptr.vmem [resolvable:$true] %s16_s16 }
   0x3   :  { %s453_s18 = smov 8  }
   0x4   :  { %22 = dma.hbm_to_vmem [thread:$0]  %s15_s14, 256, %s17_s16, [#allocation4], %s452_s17, %s452_s17, %s453_s18  }
   0x5   :  { %447 = dma.done.wait [#allocation4], 256  }
   0x6   :  { %448 = vsyncadd [#allocation4], 4294967040  ;;  %v454_v0 = vmov 0   ;;  %vm44_vm0 = vcmask 64512   ;;  %v38_v1 = vld [vmem:[#allocation3] sm:$0xff]  ;;  %v39_v7 = vld [vmem:[#allocation3 + $0x8] sm:$0xff] }
   0x7   :  { %398 = vset.pattern.permute.xlu0 %v454_v0  ;;  %v40_v2 = vld [vmem:[%s504_s1] sm:$0x1]  ;;  %v41_v3 = vld [vmem:[%s504_s1 + $0x1] sm:$0x1]  ;;  %v63_v4 = vand.u32 4294901760, %v38_v1  ;;  %v212_v11 = vand.u32 4294901760, %v39_v7 }
   0x8   :  { %v46_v5 = vsel %vm44_vm0, %v40_v2, 0  ;;  %v195_v6 = vsel %vm44_vm0, %v41_v3, 0  ;;  %v353_v8 = vld [vmem:[%s505_s2] sm:$0x1]  ;;  %v354_v21 = vld [vmem:[%s505_s2 + $0x1] sm:$0x1] }
   0x9   :  { %v65_v9 = vand.u32 4294901760, %v46_v5  ;;  %v214_v10 = vand.u32 4294901760, %v195_v6  ;;  %357 = vperm.xlu0 %398, %v353_v8   ;;  %v90_v12 = vsub.f32 %v38_v1, %v63_v4  ;;  %140 = vmatpush.msra.mxu3 %v63_v4  ;;  %v239_v15 = vsub.f32 %v39_v7, %v212_v11  ;;  %s456_s2 = smov [#allocation6]   ;;  %s377_s28 = sshll.u32 %s506_s3, 4  ;;  %s378_s28 = int_to_ptr.hbm [resolvable:$true] %s377_s28 }
   0xa   :  { %64 = vmatpush.msra.mxu0 %v63_v4  ;;  %vm35_vm1 = vcmask 253952   ;;  %v455_v29 = vmov 0.0   ;;  %s375_s25 = sshll.u32 %s456_s2, 4  ;;  %s457_s29 = smov 16   ;;  %s376_s25 = int_to_ptr.vmem [resolvable:$true] %s375_s25 }
   0xb   :  { %v66_v13 = vsub.f32 %v46_v5, %v65_v9  ;;  %v215_v14 = vsub.f32 %v195_v6, %v214_v10  ;;  %117 = vmatpush.msra.mxu2 %v90_v12  ;;  %v91_v16 = vand.u32 4294901760, %v90_v12  ;;  %v240_v18 = vand.u32 4294901760, %v239_v15  ;;  %36 = vst.msk [vmem:[#allocation2] sm:$0x1] %vm35_vm1, %v455_v29  ;;  %s458_s30 = smov 1  }
   0xc   :  { %37 = vst.msk [vmem:[#allocation2 + $0x1] sm:$0x1] %vm35_vm1, %v455_v29 }
   0xd   :  { %120 = vmatmul.f32.vlgmr.msra.gmra.mxu2 %v66_v13  ;;  %v67_v17 = vand.u32 4294901760, %v66_v13  ;;  %v216_v19 = vand.u32 4294901760, %v215_v14  ;;  %v92_v20 = vsub.f32 %v90_v12, %v91_v16  ;;  %166 = vmatpush.msrb.mxu0 %v91_v16  ;;  %v241_v23 = vsub.f32 %v239_v15, %v240_v18 }
   0xe   :  { %213 = vmatpush.msrb.mxu2 %v212_v11 }
   0xf   :  { %144 = vmatmul.f32.vlgmr.msra.gmra.mxu3 %v67_v17  ;;  %v68_v22 = vsub.f32 %v66_v13, %v67_v17  ;;  %v217_v24 = vsub.f32 %v215_v14, %v216_v19  ;;  %v93_v25 = vand.u32 4294901760, %v92_v20  ;;  %v242_v27 = vand.u32 4294901760, %v241_v23 }
  0x10   :  { %315 = vmatpush.msra.mxu2 %v240_v18 }
  0x11   :  { %v69_v26 = vand.u32 4294901760, %v68_v22  ;;  %v218_v28 = vand.u32 4294901760, %v217_v24  ;;  %363 = vperm.xlu0 %398, %v354_v21   ;;  %94 = vmatpush.msra.mxu1 %v93_v25 }
  0x12   :  { %96 = vmatmul.f32.vlgmr.msra.gmra.mxu1 %v65_v9  ;;  %243 = vmatpush.msrb.mxu3 %v242_v27  ;;  %v42_v41 = vld [vmem:[#allocation2] sm:$0x1] }
  0x13   :  { %70 = vmatmul.f32.vlgmr.msra.gmra.mxu0 %v69_v26  ;;  %188 = vmatpush.msrb.mxu1 %v63_v4  ;;  %v43_v56 = vld [vmem:[#allocation2 + $0x1] sm:$0x1] }
  0x14   :  { %266 = vmatpush.msra.mxu0 %v239_v15  ;;  %337 = vmatpush.msra.mxu3 %v212_v11 }
  0x15   :  { %219 = vmatmul.f32.vlgmr.msrb.gmra.mxu2 %v218_v28  ;;  %289 = vmatpush.msra.mxu1 %v212_v11 }
  0x17   :  { %245 = vmatmul.f32.vlgmr.msrb.gmra.mxu3 %v214_v10 }
  0x1a   :  { %190 = vmatmul.f32.vlgmr.msrb.gmra.mxu1 %v65_v9 }
  0x1b   :  { %168 = vmatmul.f32.vlgmr.msrb.gmra.mxu0 %v65_v9 }
  0x1d   :  { %317 = vmatmul.f32.vlgmr.msra.gmra.mxu2 %v214_v10 }
  0x1f   :  { %339 = vmatmul.f32.vlgmr.msra.gmra.mxu3 %v214_v10 }
  0x22   :  { %293 = vmatmul.f32.vlgmr.msra.gmra.mxu1 %v216_v19 }
  0x23   :  { %269 = vmatmul.f32.vlgmr.msra.gmra.mxu0 %v215_v14 }
  0x7b   :  { %v358_v49 = vpop.permute.xlu0 %357 }
  0x7c   :  { %v360_v51 = vperm.slane %v358_v49, 0 }
  0x83   :  { %v364_v60 = vpop.permute.xlu0 %363 }
  0x84   :  { %v366_v61 = vperm.slane %v364_v60, 0 }
  0x8f   :  { %v97_v31 = vpop.f32.mrf.mxu1 }
  0x90   :  { %v71_v30 = vpop.f32.mrf.mxu0  ;;  %v121_v33 = vpop.f32.mrf.mxu2 }
  0x91   :  { %v98_v32 = vadd.f32 %v97_v31, %v71_v30 }
  0x92   :  { %v145_v34 = vpop.f32.mrf.mxu3 }
  0x93   :  { %v122_v35 = vadd.f32 %v121_v33, %v98_v32 }
  0x95   :  { %v146_v36 = vadd.f32 %v145_v34, %v122_v35 }
  0x97   :  { %v191_v38 = vpop.f32.mrf.mxu1 }
  0x98   :  { %v169_v37 = vpop.f32.mrf.mxu0  ;;  %v220_v40 = vpop.f32.mrf.mxu2 }
  0x99   :  { %v170_v39 = vadd.f32 %v169_v37, %v146_v36 }
  0x9a   :  { %v246_v43 = vpop.f32.mrf.mxu3 }
  0x9b   :  { %v192_v42 = vadd.f32 %v191_v38, %v170_v39  ;;  %v247_v45 = vadd.f32 %v246_v43, %v220_v40 }
  0x9d   :  { %v343_v44 = vadd.f32 %v192_v42, %v42_v41 }
  0x9f   :  { %346 = vst.msk [vmem:[#allocation2] sm:$0x1] %vm35_vm1, %v343_v44  ;;  %v294_v47 = vpop.f32.mrf.mxu1 }
  0xa0   :  { %v270_v46 = vpop.f32.mrf.mxu0  ;;  %v318_v50 = vpop.f32.mrf.mxu2 }
  0xa1   :  { %v271_v48 = vadd.f32 %v270_v46, %v247_v45 }
  0xa2   :  { %v340_v53 = vpop.f32.mrf.mxu3 }
  0xa3   :  { %v295_v52 = vadd.f32 %v294_v47, %v271_v48 }
  0xa5   :  { %v319_v54 = vadd.f32 %v318_v50, %v295_v52 }
  0xa6   :  { %v351_v55 = vld [vmem:[#allocation2] sm:$0x1] }
  0xa7   :  { %v367_v57 = vmul.f32 %v360_v51, %v351_v55  ;;  %v341_v58 = vadd.f32 %v340_v53, %v319_v54 }
  0xa9   :  { %369 = vst.msk [vmem:[#allocation6] sm:$0x1] %vm35_vm1, %v367_v57  ;;  %v344_v59 = vadd.f32 %v341_v58, %v43_v56 }
  0xab   :  { %347 = vst.msk [vmem:[#allocation2 + $0x1] sm:$0x1] %vm35_vm1, %v344_v59 }
  0xb2   :  { %v352_v62 = vld [vmem:[#allocation2 + $0x1] sm:$0x1] }
  0xb3   :  { %v368_v63 = vmul.f32 %v366_v61, %v352_v62 }
  0xb5   :  { %370 = vst.msk [vmem:[#allocation6 + $0x1] sm:$0x1] %vm35_vm1, %v368_v63 }
  0xb6   :  { %383 = dma.vmem_to_hbm [thread:$0]  %s376_s25, 32, %s378_s28, [#allocation5], %s457_s29, %s457_s29, %s458_s30  }
  0xb7   :  { %449 = dma.done.wait [#allocation5], 32  }
  0xb8   :  { %450 = vsyncadd [#allocation5], 4294967264 }
  0xb9   :  { %388 = vsyncpa [#allocation4], 1 }
  0xba   :  { %389 = vsyncpa [#allocation5], 1 }

</bundles_post_ra>
